<compile_context>
chip_gen: v5e
topology: v5e:2x2
jax: 0.10.0
libtpu: 0.0.40
codegen_flags: <defaults>
</compile_context>

<pallas_src>
import numpy as np
import jax
import jax.numpy as jnp
from jax.experimental import pallas as pl
from jax.experimental.pallas import tpu as pltpu


def _sigmoid_kernel(x_ref, o_ref):
    # Cast to f32 in-kernel (HBM traffic stays in the input's native width),
    # compute logistic, cast back to the output dtype (== input dtype).
    x = x_ref[...].astype(jnp.float32)
    o_ref[...] = (1.0 / (1.0 + jnp.exp(-x))).astype(o_ref.dtype)


def _round_up(v, m):
    return ((v + m - 1) // m) * m


def _choose_lane_tile(plane, z, itemsize, target_bytes=2 << 20):
    """Pick a lane tile: multiple of 128 lanes, ~target_bytes per (1, z, tile) block,
    never larger than the lane-padded plane. Keeps 2 in + 2 out buffers well under
    every generation's default scoped VMEM while giving enough grid steps to pipeline."""
    lanes = max(1, target_bytes // max(1, z * itemsize))
    tile = max(128, (lanes // 128) * 128)
    tile = min(tile, _round_up(plane, 128))
    return tile


class VisibilityFeatureExtractor:
    """JAX/Pallas port of the PyTorch VisibilityFeatureExtractor."""

    def __init__(self, voxel_size=(0.25, 0.25, 8), pc_range=(-50, -50, -5, 50, 50, 3),
                 max_sweeps=10):
        self.name = "VisibilityFeatureNet"
        self.voxel_size = float(np.min(voxel_size))
        self.pc_range = pc_range
        px_min, py_min, pz_min, px_max, py_max, pz_max = pc_range
        self.x_size = int(np.ceil((px_max - px_min) / self.voxel_size))
        self.y_size = int(np.ceil((py_max - py_min) / self.voxel_size))
        self.z_size = int(np.ceil((pz_max - pz_min) / self.voxel_size))
        self.max_sweeps = max_sweeps
        # No learnable parameters (matches the PyTorch __init__).

    def __call__(self, logodds):
        z, y, x = self.z_size, self.y_size, self.x_size
        vol = z * y * x
        total = int(np.prod(logodds.shape))
        assert total % vol == 0, "logodds size must be divisible by z*y*x"
        b = total // vol
        plane = y * x

        # (B, Z, Y*X): free reshape (row-major layout unchanged); last two dims map onto
        # (sublane, lane). No wrapper-side astype — casting happens inside the kernel.
        x_in = jnp.reshape(logodds, (b, z, plane))

        itemsize = jnp.dtype(x_in.dtype).itemsize
        tile_l = _choose_lane_tile(plane, z, itemsize)
        n_tiles = pl.cdiv(plane, tile_l)  # Pallas masks the partial last tile's writes

        out = pl.pallas_call(
            _sigmoid_kernel,
            out_shape=jax.ShapeDtypeStruct((b, z, plane), x_in.dtype),
            grid_spec=pltpu.PrefetchScalarGridSpec(
                num_scalar_prefetch=0,
                grid=(b, n_tiles),
                in_specs=[pl.BlockSpec((1, z, tile_l), lambda i, j: (i, 0, j))],
                out_specs=pl.BlockSpec((1, z, tile_l), lambda i, j: (i, 0, j)),
            ),
            compiler_params=pltpu.CompilerParams(
                dimension_semantics=("parallel", "parallel")),
            # TODO(synk): add input_output_aliases={0: 0} when callers no longer need
            # logodds after the call (same shape/dtype), to avoid a second full-volume
            # HBM allocation. Skipped here because the test re-reads logodds.
        )(x_in)

        # Final reshape to (-1, Z, Y, X), matching torch's occupancy.reshape(...).
        return jnp.reshape(out, (b, z, y, x))


if __name__ == "__main__":
    # Small-shape configuration consistent with the module's geometry math:
    # voxel = min(0.25, 0.25, 8) = 0.25; ranges chosen so x_size = y_size = 16, z_size = 8.
    extractor = VisibilityFeatureExtractor(
        voxel_size=(0.25, 0.25, 8),
        pc_range=(-2.0, -2.0, -1.0, 2.0, 2.0, 1.0),
        max_sweeps=10,
    )

    B = 2
    key = jax.random.PRNGKey(0)
    logodds = jax.random.normal(
        key, (B, extractor.z_size * extractor.y_size * extractor.x_size),
        dtype=jnp.float32)

    occupancy = extractor(logodds)
    occupancy = jax.block_until_ready(occupancy)

    # Correctness check against plain JAX reference (f32 I/O -> tight tolerance holds).
    ref = jax.nn.sigmoid(logodds).reshape(
        (-1, extractor.z_size, extractor.y_size, extractor.x_size))
    np.testing.assert_allclose(np.asarray(occupancy), np.asarray(ref),
                               rtol=1e-6, atol=1e-6)
    assert occupancy.shape == (B, extractor.z_size, extractor.y_size, extractor.x_size)

    print("KERNEL_OK")
</pallas_src>

<mosaic_0001>
module attributes {stable_mosaic.version = 11 : i64} {
  func.func @_sigmoid_kernel(%arg0: i32, %arg1: i32, %arg2: memref<1x8x256xf32, #tpu.memory_space<vmem>>, %arg3: memref<1x8x256xf32, #tpu.memory_space<vmem>>) attributes {dimension_semantics = [#tpu.dimension_semantics<parallel>, #tpu.dimension_semantics<parallel>], iteration_bounds = array<i64: 2, 1>, scalar_prefetch = 0 : i64, scratch_operands = 0 : i64, tpu.core_type = #tpu.core_type<tc>, window_params = [{transform_indices = @transform_0, window_bounds = array<i64: 1, 8, 256>}, {transform_indices = @transform_1, window_bounds = array<i64: 1, 8, 256>}]} {
    %c0 = arith.constant 0 : index
    %c0_0 = arith.constant 0 : index
    %c0_1 = arith.constant 0 : index
    %0 = vector.load %arg2[%c0, %c0_0, %c0_1] : memref<1x8x256xf32, #tpu.memory_space<vmem>>, vector<1x8x256xf32>
    %cst = arith.constant 0.000000e+00 : f32
    %1 = vector.broadcast %cst : f32 to vector<1x8x256xf32>
    %2 = arith.subf %1, %0 : vector<1x8x256xf32>
    %3 = math.exp %2 : vector<1x8x256xf32>
    %cst_2 = arith.constant 1.000000e+00 : f32
    %4 = vector.broadcast %cst_2 : f32 to vector<1x8x256xf32>
    %5 = arith.addf %4, %3 : vector<1x8x256xf32>
    %cst_3 = arith.constant 1.000000e+00 : f32
    %6 = vector.broadcast %cst_3 : f32 to vector<1x8x256xf32>
    %7 = arith.divf %6, %5 : vector<1x8x256xf32>
    %c0_4 = arith.constant 0 : index
    %c0_5 = arith.constant 0 : index
    %c0_6 = arith.constant 0 : index
    %8 = vector.load %arg3[%c0_4, %c0_5, %c0_6] : memref<1x8x256xf32, #tpu.memory_space<vmem>>, vector<1x8x256xf32>
    tpu.vector_store %arg3[%c0_4, %c0_5, %c0_6], %7 {strides = array<i32>} : memref<1x8x256xf32, #tpu.memory_space<vmem>>, vector<1x8x256xf32>,
    return
  }
  func.func @transform_0(%arg0: i32, %arg1: i32) -> (i32, i32, i32) {
    %c0_i32 = arith.constant 0 : i32
    %c0_i32_0 = arith.constant 0 : i32
    return %arg0, %c0_i32, %arg1 : i32, i32, i32
  }
  func.func @transform_1(%arg0: i32, %arg1: i32) -> (i32, i32, i32) {
    %c0_i32 = arith.constant 0 : i32
    %c0_i32_0 = arith.constant 0 : i32
    return %arg0, %c0_i32, %arg1 : i32, i32, i32
  }
}

</mosaic_0001>

<bundles_post_ra>
// kernel: tpu_custom_call.1
= control target key start
LH: loop header
LB: loop body
LE: loop exit
PB: predicated region body
PF: predicated region fallthrough
CT: control target
= control target key end

     0   :  { %6 = vsyncpa [#allocation3], 0  ;;  %s635_s0 = inlined_call_operand.hbm [shape: f32[2,8,256], index: 0, kind: input, shape index: {}]   ;;  %s636_s1 = inlined_call_operand.hbm [shape: f32[2,8,256], index: 1, kind: output, shape index: {}]  }
   0x1   :  { %8 = vsyncpa [#allocation3 + $0x1], 0 }
   0x2   :  { %9 = vsyncpa [#allocation4], 0 }
   0x3   :  { %11 = vsyncpa [#allocation4 + $0x1], 0  ;;  %s511_s6 = smov 0   ;;  %s513_s7 = smov 0  }
   0x4   :  { %s515_s8 = smov 0   ;;  %s517_s9 = smov 0  }
   0x5   :  { %s519_s10 = smov 0   ;;  %s521_s11 = smov 0  }
   0x6 LB: > { %s300_s12 = sadd.s32 4294967295, %s499_s11   ;;  %s301_s13 = sadd.s32 4294967294, %s499_s11   ;;  %s499_s11 = sphi %s521_s11, %s17_s11   ;;  %s495_s10 = sphi %s519_s10, %s645_s10   ;;  %s491_s9 = sphi %s517_s9, %s644_s9   ;;  %s487_s8 = sphi %s515_s8, %s643_s8   ;;  %s483_s7 = sphi %s513_s7, %s642_s7   ;;  %s479_s6 = sphi %s511_s6, %s641_s6  }
   0x7   : > { %s29_s14 = sadd.s32 1, %s495_s10  ;;  %s38_s15 = sadd.s32 1, %s487_s8 }
   0x8   : > { %p31_p0 = scmp.ge.s32.totalorder %s29_s14, 2  ;;  %p45_p1 = scmp.ne.s32.totalorder %s487_s8, %s483_s7 }
   0x9   : > { %p46_p2 = scmp.eq.s32.totalorder %s499_s11, 0  ;;  %p51_p3 = scmp.ne.s32.totalorder %s483_s7, %s479_s6 }
   0xa   : > { %s647_s14 = smov (%p31_p0, %s29_s14), 0  ;;  %p52_p5 = scmp.eq.s32.totalorder %s300_s12, 0 }
   0xb   : > { %p552_p4 = por %p46_p2, %p45_p1  ;;  %s33_s17 = ssub.s32 %s495_s10, %s647_s14 }
   0xc   : > { %p77_p6 = scmp.eq.s32.totalorder %s300_s12, 1  ;;  %p36_p7 = scmp.eq.s32.totalorder %s33_s17, 0 }
   0xd   : > { %p558_p8 = por %p52_p5, %p51_p3  ;;  %p83_p10 = scmp.eq.s32.totalorder %s301_s13, 1 }
   0xe   : > { %p562_p9 = por %p77_p6, %p45_p1  ;;  %p303_p12 = scmp.ge.s32.totalorder %s499_s11, 2 }
   0xf   : > { %s567_s20 = scalar_select %p36_p7, %s487_s8, %s38_s15  }
  0x10   : > { %p569_p11 = por %p83_p10, %p51_p3  ;;  %p329_p13 = scmp.lt.s32.totalorder %s499_s11, 2 }
  0x11   : > { %s103_s22 = sand.u32 1, %s487_s8   ;;  %s315_s24 = sshll.u32 %s495_s10, 4 }
  0x12   : > { %s304_s23 = sshll.u32 %s103_s22, 4  ;;  %s114_s27 = scalar_lea.hbm %s635_s0, %s315_s24 }
  0x13   : > { %s107_s28 = scalar_lea.vmem [#allocation2], %s304_s23  ;;  %s116_s30 = sshll.u32 %s114_s27, 4  ;;  %s117_s30 = int_to_ptr.hbm [resolvable:$true] %s116_s30 }
  0x14   : > { %s118_s29 = sshll.u32 %s107_s28, 4  ;;  %p322_p0 = pnand %p329_p13, %p552_p4  ;;  %s119_s29 = int_to_ptr.vmem [resolvable:$true] %s118_s29 }
  0x15   : > { %p307_p1 = scmp.ge.s32.totalorder %s499_s11, 1  ;;  %p123_p2 = scmp.lt.s32.totalorder %s499_s11, 3 }
  0x16   : > { %s104_s2 = scalar_lea.sflag [#allocation3], %s103_s22 }
  0x17   : > { %324 = dma.hbm_to_vmem [thread:$0]  (!%p322_p0), %s117_s30, 256, %s119_s29, %s104_s2  }
  0x18   : > { %p124_p3 = pnand %p307_p1, %p123_p2 }
  0x19   : > { %s585_s3 = sand.u32 (!%p124_p3), 1, %s483_s7  }
  0x1a   : > { %127 = sbr.rel (%p124_p3) target bundleno = 67 (0x43), region = 24  ;;  %s308_s4 = sshll.u32 (!%p124_p3), %s585_s3, 4 }
  0x1b   : > { %s130_s5 = scalar_lea.sflag (!%p124_p3), [#allocation3], %s585_s3  ;;  %s133_s12 = scalar_lea.vmem (!%p124_p3), [#allocation2], %s308_s4 }
  0x1f   : > { %470 = dma.done.wait (%p558_p8), %s130_s5, 256  }
  0x20   : > { %472 = vsyncadd (%p558_p8), %s130_s5, 4294967040  ;;  %v155_v0 = vld [vmem:[%s133_s12] sm:$0xff]  ;;  %v156_v1 = vld [vmem:[%s133_s12 + $0x8] sm:$0xff]  ;;  %s316_s13 = sshll.u32 %s491_s9, 4  ;;  %s152_s9 = scalar_lea.vmem [#allocation5], %s308_s4 }
  0x21   : > { %v157_v2 = vsub.f32 0.0, %v155_v0  ;;  %v158_v3 = vsub.f32 0.0, %v156_v1  ;;  %s211_s17 = scalar_lea.hbm %s636_s1, %s316_s13  ;;  %s213_s18 = sshll.u32 %s152_s9, 4  ;;  %s214_s18 = int_to_ptr.vmem [resolvable:$true] %s213_s18 }
  0x22   : > { %s215_s22 = sshll.u32 %s211_s17, 4  ;;  %s198_s23 = scalar_lea.sflag [#allocation4], %s585_s3  ;;  %s216_s22 = int_to_ptr.hbm [resolvable:$true] %s215_s22 }
  0x23   : > { %v159_v4 = vmul.f32 1.442695, %v157_v2  ;;  %v161_v5 = vmul.f32 1.442695, %v158_v3  ;;  %s431_s24 = sshra.s32 %s216_s22, 4  ;;  %s437_s28 = scalar_lea.hbm %s636_s1, 32  ;;  %s432_s24 = int_to_ptr.hbm [resolvable:$true] %s431_s24 }
  0x24   : > { %s433_s25 = scalar_lea.hbm %s432_s24, 16  ;;  %p438_p7 = scmp.lt.s32.totalorder %s432_s24, %s636_s1 }
  0x25   : > { %379 = vpow2.f32 %v159_v4  ;;  %p434_p4 = scmp.ne.s32.totalorder %s432_s24, %s433_s25  ;;  %p439_p8 = scmp.lt.s32.totalorder %s437_s28, %s433_s25 }
  0x26   : > { %381 = vpow2.f32 %v161_v5 }
  0x27   : > { %p435_p5 = pnand %p434_p4, %p562_p9  ;;  %p440_p10 = por %p439_p8, %p438_p7 }
  0x29   : > { %p436_p6 = pneg %p435_p5 }
  0x2b   : > { %v380_v6 = vpop.eup %379  ;;  %p441_p13 = pnand %p440_p10, %p436_p6 }
  0x2c   : > { %v382_v7 = vpop.eup %381  ;;  %v163_v8 = vadd.f32 1.0, %v380_v6 }
  0x2d   : > { %v164_v9 = vadd.f32 1.0, %v382_v7 }
  0x2e   : > { %383 = vrcp.f32 %v163_v8  ;;  %vm170_vm0 = vweird.f32 %v163_v8  ;;  %v176_v13 = vand.u32 2147483648, %v163_v8  ;;  %v174_v16 = vand.u32 2147483647, %v163_v8 }
  0x2f   : > { %385 = vrcp.f32 %v164_v9  ;;  %v191_v17 = vand.u32 2147483648, %v164_v9  ;;  %vm185_vm2 = vweird.f32 %v164_v9  ;;  %v189_v19 = vand.u32 2147483647, %v164_v9 }
  0x30   : > { %v177_v21 = vor.u32 1.1754944e-38, %v176_v13  ;;  %vm175_vm5 = vcmp.eq.f32.partialorder %v174_v16, 8.507059e+37 }
  0x31   : > { %v192_v24 = vor.u32 1.1754944e-38, %v191_v17  ;;  %vm190_vm7 = vcmp.eq.f32.partialorder %v189_v19, 8.507059e+37 }
  0x34   : > { %v384_v10 = vpop.eup %383 }
  0x35   : > { %v386_v11 = vpop.eup %385  ;;  %v166_v12 = vmul.f32 %v384_v10, %v163_v8  ;;  %vm171_vm1 = vweird.f32 %v384_v10 }
  0x36   : > { %v181_v14 = vmul.f32 %v386_v11, %v164_v9  ;;  %vm186_vm3 = vweird.f32 %v386_v11  ;;  %vm172_vm4 = vmor %vm170_vm0, %vm171_vm1 }
  0x37   : > { %v167_v15 = vsub.f32 1.0, %v166_v12  ;;  %vm187_vm6 = vmor %vm185_vm2, %vm186_vm3 }
  0x38   : > { %v182_v18 = vsub.f32 1.0, %v181_v14 }
  0x39   : > { %v168_v20 = vmul.f32 %v384_v10, %v167_v15 }
  0x3a   : > { %v183_v22 = vmul.f32 %v386_v11, %v182_v18 }
  0x3b   : > { %v169_v23 = vadd.f32 %v384_v10, %v168_v20 }
  0x3c   : > { %v184_v25 = vadd.f32 %v386_v11, %v183_v22 }
  0x3d   : > { %v173_v26 = vsel %vm172_vm4, %v384_v10, %v169_v23 }
  0x3e   : > { %v178_v27 = vsel %vm175_vm5, %v177_v21, %v173_v26  ;;  %v188_v28 = vsel %vm187_vm6, %v386_v11, %v184_v25 }
  0x3f   : > { %195 = vst [vmem:[%s152_s9] sm:$0xff] %v178_v27  ;;  %v193_v29 = vsel %vm190_vm7, %v192_v24, %v188_v28 }
  0x40   : > { %196 = vst [vmem:[%s152_s9 + $0x8] sm:$0xff] %v193_v29 }
  0x41   : > { %444 = shalt.err (!%p441_p13)
}
  0x42   : > { %319 = dma.vmem_to_hbm [thread:$0]  (%p562_p9), %s214_s18, 256, %s216_s22, %s198_s23  }
  0x43 PF: > { %s227_s2 = sand.u32 1, %s479_s6   ;;  %p326_p0 = pnand %p303_p12, %p569_p11 }
  0x44   : > { %s228_s3 = scalar_lea.sflag [#allocation4], %s227_s2 }
  0x45   : > { %p327_p1 = pneg %p326_p0 }
  0x47   : > { %474 = dma.done.wait (%p327_p1), %s228_s3, 256  }
  0x48   : > { %476 = vsyncadd (%p327_p1), %s228_s3, 4294967040  ;;  %s17_s11 = sadd.s32 1, %s499_s11   ;;  %s641_s6 = smov %s483_s7 }
  0x49   : > { %p14_p2 = scmp.ge.s32.totalorder %s17_s11, 4   ;;  %s642_s7 = smov %s487_s8 }
  0x4a   : > { %s643_s8 = smov %s567_s20  ;;  %s644_s9 = smov %s495_s10 }
  0x4b   : > { %s645_s10 = smov %s647_s14  ;;  %16 = sbr.rel (!%p14_p2) target bundleno = 6 (0x6), region = 69 }
  0x50   :  { %234 = vsyncpa [#allocation3], 1 }
  0x51   :  { %236 = vsyncpa [#allocation3 + $0x1], 1 }
  0x52   :  { %237 = vsyncpa [#allocation4], 1 }
  0x53   :  { %239 = vsyncpa [#allocation4 + $0x1], 1 }

</bundles_post_ra>
